<compile_context>
chip_gen: v5e
topology: v5e:2x2
jax: 0.10.0
libtpu: 0.0.40
codegen_flags: <defaults>
</compile_context>

<pallas_src>
import functools

import jax
import jax.numpy as jnp
from jax.experimental import pallas as pl
from jax.experimental.pallas import tpu as pltpu

LN_EPS = 1e-12  # matches dee transformer.LayerNorm (BERT-style)


def _round_up(x, m):
    return ((x + m - 1) // m) * m


def _tpu_vmem_and_cores():
    """Best-effort (VMEM capacity, #TensorCores) query with a safe fallback."""
    try:
        vmem = int(pltpu.get_tpu_info().vmem_capacity_bytes)
    except Exception:
        vmem = 64 * 1024 * 1024  # conservative: v7x per-TC VMEM
    # v5e/v6e: 128 MiB VMEM, 1 TC.  v7x: 64 MiB VMEM per TC, 2 TCs.
    num_tc = 2 if vmem <= 64 * 1024 * 1024 else 1
    return vmem, num_tc


def _mention_type_kernel(x_ref, ids_ref, emb_ref, gamma_ref, beta_ref,
                         mask_ref, out_ref, *, h_real, num_types):
    # x_ref:      (TM, Hp)  mention embeddings tile
    # ids_ref:    (TM, 1)   int32 mention type ids
    # emb_ref:    (T,  Hp)  full embedding table (f32, pre-cast in wrapper)
    # gamma/beta: (1,  Hp)  (f32, pre-cast in wrapper)
    # mask_ref:   (1,  Hp)  constant lane mask (1.0 for real lanes, else 0.0)
    tm, h_pad = x_ref.shape

    # Hoisted lane-broadcast of the ids column: JAX does not CSE
    # broadcast_in_dim, so one explicit broadcast replaces T of them.
    ids_b = jnp.broadcast_to(ids_ref[...], (tm, h_pad))    # (TM, Hp) int32

    # Embedding gather: T is tiny, so T VPU compare+selects beat a one-hot
    # (TM, T) @ (T, Hp) MXU matmul here (kernel is HBM-bound; MXU stays free).
    # Out-of-range ids yield a zero type embedding (PyTorch would raise).
    type_emb = jnp.zeros((tm, h_pad), jnp.float32)
    for t in range(num_types):                             # static unroll, T~7
        row = emb_ref[pl.ds(t, 1), :]                      # (1, Hp)
        type_emb = jnp.where(ids_b == t, row, type_emb)

    x = x_ref[...].astype(jnp.float32) + type_emb          # residual add

    # LayerNorm over the *real* hidden width.  Padded lanes of x are zero, so
    # the row sum is already exact; only the deviations need masking, via a
    # precomputed constant mask (no per-step iota/compare).
    mean = jnp.sum(x, axis=-1, keepdims=True) * (1.0 / h_real)
    d = x - mean
    if h_real != h_pad:
        d = d * mask_ref[...]
    var = jnp.sum(d * d, axis=-1, keepdims=True) * (1.0 / h_real)
    y = d * jax.lax.rsqrt(var + LN_EPS) * gamma_ref[...] + beta_ref[...]

    # Dropout(p=0.1): identity at inference (forward/eval semantics).
    # TODO(synk): training-mode dropout RNG not implemented (eval forward only).
    out_ref[...] = y.astype(out_ref.dtype)


def mention_type_encoder(batch_mention_emb, mention_type_ids, emb_table,
                         gamma, beta, *, tile_m=2048, vmem_budget_bytes=None):
    """out = LayerNorm(batch_mention_emb + embedding[mention_type_ids])."""
    n, h = batch_mention_emb.shape
    num_types = emb_table.shape[0]
    out_dtype = batch_mention_emb.dtype
    x_bytes = jnp.dtype(batch_mention_emb.dtype).itemsize
    o_bytes = jnp.dtype(out_dtype).itemsize

    h_pad = _round_up(h, 128)                 # lane-dense last dim

    # --- generation-aware budget ---------------------------------------------
    vmem_cap, num_tc = _tpu_vmem_and_cores()
    if vmem_budget_bytes is None:
        # ~48 MiB on v7x (64 MiB physical), ~96 MiB on v5e/v6e (128 MiB).
        vmem_budget_bytes = int(0.75 * vmem_cap)

    # --- choose the row tile -------------------------------------------------
    tile = _round_up(min(tile_m, _round_up(n, 8)), 8)
    # Split for the megacore only when the chip actually has 2 TensorCores and
    # there is enough data: aim for >= 2 grid steps per core so each core's
    # pipeline can overlap prefetch/writeback; skip entirely for small N where
    # the fixed per-step cost would exceed the work handed to the second core.
    if num_tc >= 2 and n >= 1024:
        min_steps = 2 * num_tc
        if pl.cdiv(n, tile) < min_steps:
            tile = max(8, _round_up(pl.cdiv(n, min_steps), 8))

    def _footprint(t):
        # double-buffered x + out + ids tiles, plus the (double-buffered by
        # default) resident table / gamma / beta / mask blocks.
        return (2 * (t * h_pad * x_bytes + t * h_pad * o_bytes + t * 128 * 4)
                + 2 * (num_types * h_pad * 4 + 3 * h_pad * 4))

    while _footprint(tile) > vmem_budget_bytes and tile > 8:
        tile = max(8, (tile // 2) // 8 * 8)

    n_pad = pl.cdiv(n, tile) * tile
    grid = (n_pad // tile,)
    # Cap the scoped-VMEM request at the budget (<= 0.75 x physical) so Mosaic
    # keeps headroom for internal scratch/semaphores, esp. on 64-MiB v7x.
    vmem_limit = int(min(vmem_budget_bytes,
                         max(32 * 1024 * 1024, 2 * _footprint(tile))))

    # --- pad + pre-cast (hoists constant-block casts out of the kernel) ------
    x = batch_mention_emb
    ids2d = mention_type_ids.astype(jnp.int32).reshape(n, 1)
    gamma2d = gamma.reshape(1, h).astype(jnp.float32)
    beta2d = beta.reshape(1, h).astype(jnp.float32)
    emb_f32 = emb_table.astype(jnp.float32)
    mask2d = jnp.ones((1, h), jnp.float32)
    if h_pad != h:
        x = jnp.pad(x, ((0, 0), (0, h_pad - h)))
        emb_f32 = jnp.pad(emb_f32, ((0, 0), (0, h_pad - h)))
        gamma2d = jnp.pad(gamma2d, ((0, 0), (0, h_pad - h)))
        beta2d = jnp.pad(beta2d, ((0, 0), (0, h_pad - h)))
        mask2d = jnp.pad(mask2d, ((0, 0), (0, h_pad - h)))
    if n_pad != n:
        x = jnp.pad(x, ((0, n_pad - n), (0, 0)))
        ids2d = jnp.pad(ids2d, ((0, n_pad - n), (0, 0)))   # pad id 0 (valid)

    kernel = functools.partial(_mention_type_kernel, h_real=h,
                               num_types=num_types)
    out = pl.pallas_call(
        kernel,
        out_shape=jax.ShapeDtypeStruct((n_pad, h_pad), out_dtype),
        grid_spec=pltpu.PrefetchScalarGridSpec(
            num_scalar_prefetch=0,
            grid=grid,
            in_specs=[
                pl.BlockSpec((tile, h_pad), lambda i: (i, 0)),       # x
                pl.BlockSpec((tile, 1), lambda i: (i, 0)),           # ids
                pl.BlockSpec((num_types, h_pad), lambda i: (0, 0)),  # table
                pl.BlockSpec((1, h_pad), lambda i: (0, 0)),          # gamma
                pl.BlockSpec((1, h_pad), lambda i: (0, 0)),          # beta
                pl.BlockSpec((1, h_pad), lambda i: (0, 0)),          # lane mask
            ],
            out_specs=pl.BlockSpec((tile, h_pad), lambda i: (i, 0)),
        ),
        compiler_params=pltpu.CompilerParams(
            dimension_semantics=("parallel",),
            vmem_limit_bytes=vmem_limit),
    )(x, ids2d, emb_f32, gamma2d, beta2d, mask2d)
    return out[:n, :h]


def _reference(batch_mention_emb, mention_type_ids, emb_table, gamma, beta):
    type_emb = emb_table[mention_type_ids]
    x = batch_mention_emb + type_emb
    mean = jnp.mean(x, axis=-1, keepdims=True)
    var = jnp.mean(jnp.square(x - mean), axis=-1, keepdims=True)
    return (x - mean) / jnp.sqrt(var + LN_EPS) * gamma + beta


if __name__ == "__main__":
    key = jax.random.PRNGKey(0)
    k1, k2, k3, k4, k5 = jax.random.split(key, 5)

    num_mentions = 16      # N (arbitrary N handled via row padding)
    hidden_size = 32       # H (padded to 128 lanes inside the wrapper)
    num_ment_types = 7     # T

    batch_mention_emb = jax.random.normal(k1, (num_mentions, hidden_size),
                                          dtype=jnp.float32)
    mention_type_ids = jax.random.randint(k2, (num_mentions,), 0,
                                          num_ment_types, dtype=jnp.int32)
    # Deterministic synthetic parameters (not a checkpoint load).
    emb_table = jax.random.normal(k3, (num_ment_types, hidden_size),
                                  dtype=jnp.float32)
    gamma = jnp.ones((hidden_size,), jnp.float32) + 0.01 * jax.random.normal(
        k4, (hidden_size,), dtype=jnp.float32)
    beta = 0.01 * jax.random.normal(k5, (hidden_size,), dtype=jnp.float32)

    out = mention_type_encoder(batch_mention_emb, mention_type_ids,
                               emb_table, gamma, beta)
    jax.block_until_ready(out)
    ref_out = _reference(batch_mention_emb, mention_type_ids,
                         emb_table, gamma, beta)
    assert jnp.allclose(out, ref_out, atol=1e-4, rtol=1e-4)

    # Second (still small) check: multi-step grid + row/lane padding paths.
    kb = jax.random.split(jax.random.PRNGKey(1), 3)
    n2, h2 = 300, 96
    x2 = jax.random.normal(kb[0], (n2, h2), dtype=jnp.float32)
    ids2 = jax.random.randint(kb[1], (n2,), 0, num_ment_types, dtype=jnp.int32)
    emb2 = jax.random.normal(kb[2], (num_ment_types, h2), dtype=jnp.float32)
    g2 = jnp.ones((h2,), jnp.float32)
    b2 = jnp.zeros((h2,), jnp.float32)
    out2 = mention_type_encoder(x2, ids2, emb2, g2, b2, tile_m=128)
    jax.block_until_ready(out2)
    assert jnp.allclose(out2, _reference(x2, ids2, emb2, g2, b2),
                        atol=1e-4, rtol=1e-4)

    print("KERNEL_OK")
</pallas_src>

<mosaic_0001>
module attributes {stable_mosaic.version = 11 : i64} {
  func.func @_mention_type_kernel(%arg0: i32, %arg1: memref<16x128xf32, #tpu.memory_space<vmem>>, %arg2: memref<16x1xi32, #tpu.memory_space<vmem>>, %arg3: memref<7x128xf32, #tpu.memory_space<vmem>>, %arg4: memref<1x128xf32, #tpu.memory_space<vmem>>, %arg5: memref<1x128xf32, #tpu.memory_space<vmem>>, %arg6: memref<1x128xf32, #tpu.memory_space<vmem>>, %arg7: memref<16x128xf32, #tpu.memory_space<vmem>>) attributes {dimension_semantics = [#tpu.dimension_semantics<parallel>], iteration_bounds = array<i64: 1>, scalar_prefetch = 0 : i64, scratch_operands = 0 : i64, tpu.core_type = #tpu.core_type<tc>, window_params = [{transform_indices = @transform_0, window_bounds = array<i64: 16, 128>}, {transform_indices = @transform_1, window_bounds = array<i64: 16, 1>}, {pipeline_mode = #tpu.pipeline_mode<synchronous>, transform_indices = @transform_2, window_bounds = array<i64: 7, 128>}, {pipeline_mode = #tpu.pipeline_mode<synchronous>, transform_indices = @transform_3, window_bounds = array<i64: 1, 128>}, {pipeline_mode = #tpu.pipeline_mode<synchronous>, transform_indices = @transform_4, window_bounds = array<i64: 1, 128>}, {pipeline_mode = #tpu.pipeline_mode<synchronous>, transform_indices = @transform_5, window_bounds = array<i64: 1, 128>}, {transform_indices = @transform_6, window_bounds = array<i64: 16, 128>}]} {
    %c0 = arith.constant 0 : index
    %c0_0 = arith.constant 0 : index
    %0 = vector.load %arg2[%c0, %c0_0] : memref<16x1xi32, #tpu.memory_space<vmem>>, vector<16x1xi32>
    %1 = vector.shape_cast %0 : vector<16x1xi32> to vector<16x1xi32>
    %2 = vector.broadcast %1 : vector<16x1xi32> to vector<16x128xi32>
    %cst = arith.constant 0.000000e+00 : f32
    %3 = vector.broadcast %cst : f32 to vector<16x128xf32>
    %c0_1 = arith.constant 0 : index
    %c0_2 = arith.constant 0 : index
    %4 = vector.load %arg3[%c0_1, %c0_2] : memref<7x128xf32, #tpu.memory_space<vmem>>, vector<1x128xf32>
    %c0_i32 = arith.constant 0 : i32
    %5 = vector.broadcast %c0_i32 : i32 to vector<16x128xi32>
    %6 = arith.cmpi eq, %2, %5 : vector<16x128xi32>
    %7 = vector.shape_cast %4 : vector<1x128xf32> to vector<1x128xf32>
    %8 = vector.broadcast %7 : vector<1x128xf32> to vector<16x128xf32>
    %9 = arith.select %6, %8, %3 : vector<16x128xi1>, vector<16x128xf32>
    %c1 = arith.constant 1 : index
    %c0_3 = arith.constant 0 : index
    %10 = vector.load %arg3[%c1, %c0_3] : memref<7x128xf32, #tpu.memory_space<vmem>>, vector<1x128xf32>
    %c1_i32 = arith.constant 1 : i32
    %11 = vector.broadcast %c1_i32 : i32 to vector<16x128xi32>
    %12 = arith.cmpi eq, %2, %11 : vector<16x128xi32>
    %13 = vector.shape_cast %10 : vector<1x128xf32> to vector<1x128xf32>
    %14 = vector.broadcast %13 : vector<1x128xf32> to vector<16x128xf32>
    %15 = arith.select %12, %14, %9 : vector<16x128xi1>, vector<16x128xf32>
    %c2 = arith.constant 2 : index
    %c0_4 = arith.constant 0 : index
    %16 = vector.load %arg3[%c2, %c0_4] : memref<7x128xf32, #tpu.memory_space<vmem>>, vector<1x128xf32>
    %c2_i32 = arith.constant 2 : i32
    %17 = vector.broadcast %c2_i32 : i32 to vector<16x128xi32>
    %18 = arith.cmpi eq, %2, %17 : vector<16x128xi32>
    %19 = vector.shape_cast %16 : vector<1x128xf32> to vector<1x128xf32>
    %20 = vector.broadcast %19 : vector<1x128xf32> to vector<16x128xf32>
    %21 = arith.select %18, %20, %15 : vector<16x128xi1>, vector<16x128xf32>
    %c3 = arith.constant 3 : index
    %c0_5 = arith.constant 0 : index
    %22 = vector.load %arg3[%c3, %c0_5] : memref<7x128xf32, #tpu.memory_space<vmem>>, vector<1x128xf32>
    %c3_i32 = arith.constant 3 : i32
    %23 = vector.broadcast %c3_i32 : i32 to vector<16x128xi32>
    %24 = arith.cmpi eq, %2, %23 : vector<16x128xi32>
    %25 = vector.shape_cast %22 : vector<1x128xf32> to vector<1x128xf32>
    %26 = vector.broadcast %25 : vector<1x128xf32> to vector<16x128xf32>
    %27 = arith.select %24, %26, %21 : vector<16x128xi1>, vector<16x128xf32>
    %c4 = arith.constant 4 : index
    %c0_6 = arith.constant 0 : index
    %28 = vector.load %arg3[%c4, %c0_6] : memref<7x128xf32, #tpu.memory_space<vmem>>, vector<1x128xf32>
    %c4_i32 = arith.constant 4 : i32
    %29 = vector.broadcast %c4_i32 : i32 to vector<16x128xi32>
    %30 = arith.cmpi eq, %2, %29 : vector<16x128xi32>
    %31 = vector.shape_cast %28 : vector<1x128xf32> to vector<1x128xf32>
    %32 = vector.broadcast %31 : vector<1x128xf32> to vector<16x128xf32>
    %33 = arith.select %30, %32, %27 : vector<16x128xi1>, vector<16x128xf32>
    %c5 = arith.constant 5 : index
    %c0_7 = arith.constant 0 : index
    %34 = vector.load %arg3[%c5, %c0_7] : memref<7x128xf32, #tpu.memory_space<vmem>>, vector<1x128xf32>
    %c5_i32 = arith.constant 5 : i32
    %35 = vector.broadcast %c5_i32 : i32 to vector<16x128xi32>
    %36 = arith.cmpi eq, %2, %35 : vector<16x128xi32>
    %37 = vector.shape_cast %34 : vector<1x128xf32> to vector<1x128xf32>
    %38 = vector.broadcast %37 : vector<1x128xf32> to vector<16x128xf32>
    %39 = arith.select %36, %38, %33 : vector<16x128xi1>, vector<16x128xf32>
    %c6 = arith.constant 6 : index
    %c0_8 = arith.constant 0 : index
    %40 = vector.load %arg3[%c6, %c0_8] : memref<7x128xf32, #tpu.memory_space<vmem>>, vector<1x128xf32>
    %c6_i32 = arith.constant 6 : i32
    %41 = vector.broadcast %c6_i32 : i32 to vector<16x128xi32>
    %42 = arith.cmpi eq, %2, %41 : vector<16x128xi32>
    %43 = vector.shape_cast %40 : vector<1x128xf32> to vector<1x128xf32>
    %44 = vector.broadcast %43 : vector<1x128xf32> to vector<16x128xf32>
    %45 = arith.select %42, %44, %39 : vector<16x128xi1>, vector<16x128xf32>
    %c0_9 = arith.constant 0 : index
    %c0_10 = arith.constant 0 : index
    %46 = vector.load %arg1[%c0_9, %c0_10] : memref<16x128xf32, #tpu.memory_space<vmem>>, vector<16x128xf32>
    %47 = arith.addf %46, %45 : vector<16x128xf32>
    %cst_11 = arith.constant dense<0.000000e+00> : vector<16xf32>
    %48 = vector.multi_reduction <add>, %47, %cst_11 [1] : vector<16x128xf32> to vector<16xf32>
    %49 = vector.shape_cast %48 : vector<16xf32> to vector<16x1xf32>
    %cst_12 = arith.constant 3.125000e-02 : f32
    %50 = vector.broadcast %cst_12 : f32 to vector<16x1xf32>
    %51 = arith.mulf %49, %50 : vector<16x1xf32>
    %52 = vector.broadcast %51 : vector<16x1xf32> to vector<16x128xf32>
    %53 = arith.subf %47, %52 : vector<16x128xf32>
    %c0_13 = arith.constant 0 : index
    %c0_14 = arith.constant 0 : index
    %54 = vector.load %arg6[%c0_13, %c0_14] : memref<1x128xf32, #tpu.memory_space<vmem>>, vector<1x128xf32>
    %55 = vector.broadcast %54 : vector<1x128xf32> to vector<16x128xf32>
    %56 = arith.mulf %53, %55 : vector<16x128xf32>
    %57 = arith.mulf %56, %56 : vector<16x128xf32>
    %cst_15 = arith.constant dense<0.000000e+00> : vector<16xf32>
    %58 = vector.multi_reduction <add>, %57, %cst_15 [1] : vector<16x128xf32> to vector<16xf32>
    %59 = vector.shape_cast %58 : vector<16xf32> to vector<16x1xf32>
    %cst_16 = arith.constant 3.125000e-02 : f32
    %60 = vector.broadcast %cst_16 : f32 to vector<16x1xf32>
    %61 = arith.mulf %59, %60 : vector<16x1xf32>
    %cst_17 = arith.constant 9.99999996E-13 : f32
    %62 = vector.broadcast %cst_17 : f32 to vector<16x1xf32>
    %63 = arith.addf %61, %62 : vector<16x1xf32>
    %64 = math.rsqrt %63 : vector<16x1xf32>
    %65 = vector.broadcast %64 : vector<16x1xf32> to vector<16x128xf32>
    %66 = arith.mulf %56, %65 : vector<16x128xf32>
    %c0_18 = arith.constant 0 : index
    %c0_19 = arith.constant 0 : index
    %67 = vector.load %arg4[%c0_18, %c0_19] : memref<1x128xf32, #tpu.memory_space<vmem>>, vector<1x128xf32>
    %68 = vector.broadcast %67 : vector<1x128xf32> to vector<16x128xf32>
    %69 = arith.mulf %66, %68 : vector<16x128xf32>
    %c0_20 = arith.constant 0 : index
    %c0_21 = arith.constant 0 : index
    %70 = vector.load %arg5[%c0_20, %c0_21] : memref<1x128xf32, #tpu.memory_space<vmem>>, vector<1x128xf32>
    %71 = vector.broadcast %70 : vector<1x128xf32> to vector<16x128xf32>
    %72 = arith.addf %69, %71 : vector<16x128xf32>
    %c0_22 = arith.constant 0 : index
    %c0_23 = arith.constant 0 : index
    %73 = vector.load %arg7[%c0_22, %c0_23] : memref<16x128xf32, #tpu.memory_space<vmem>>, vector<16x128xf32>
    tpu.vector_store %arg7[%c0_22, %c0_23], %72 {strides = array<i32>} : memref<16x128xf32, #tpu.memory_space<vmem>>, vector<16x128xf32>,
    return
  }
  func.func @transform_0(%arg0: i32) -> (i32, i32) {
    %c0_i32 = arith.constant 0 : i32
    %c0_i32_0 = arith.constant 0 : i32
    return %arg0, %c0_i32 : i32, i32
  }
  func.func @transform_1(%arg0: i32) -> (i32, i32) {
    %c0_i32 = arith.constant 0 : i32
    %c0_i32_0 = arith.constant 0 : i32
    return %arg0, %c0_i32 : i32, i32
  }
  func.func @transform_2(%arg0: i32) -> (i32, i32) {
    %c0_i32 = arith.constant 0 : i32
    %c0_i32_0 = arith.constant 0 : i32
    %c0_i32_1 = arith.constant 0 : i32
    return %c0_i32, %c0_i32_0 : i32, i32
  }
  func.func @transform_3(%arg0: i32) -> (i32, i32) {
    %c0_i32 = arith.constant 0 : i32
    %c0_i32_0 = arith.constant 0 : i32
    %c0_i32_1 = arith.constant 0 : i32
    return %c0_i32, %c0_i32_0 : i32, i32
  }
  func.func @transform_4(%arg0: i32) -> (i32, i32) {
    %c0_i32 = arith.constant 0 : i32
    %c0_i32_0 = arith.constant 0 : i32
    %c0_i32_1 = arith.constant 0 : i32
    return %c0_i32, %c0_i32_0 : i32, i32
  }
  func.func @transform_5(%arg0: i32) -> (i32, i32) {
    %c0_i32 = arith.constant 0 : i32
    %c0_i32_0 = arith.constant 0 : i32
    %c0_i32_1 = arith.constant 0 : i32
    return %c0_i32, %c0_i32_0 : i32, i32
  }
  func.func @transform_6(%arg0: i32) -> (i32, i32) {
    %c0_i32 = arith.constant 0 : i32
    %c0_i32_0 = arith.constant 0 : i32
    return %arg0, %c0_i32 : i32, i32
  }
}

</mosaic_0001>

<bundles_post_ra>
// kernel: tpu_custom_call.1
= control target key start
LH: loop header
LB: loop body
LE: loop exit
PB: predicated region body
PF: predicated region fallthrough
CT: control target
= control target key end

     0   :  { %11 = vsyncpa [#allocation3], 0  ;;  %s310_s0 = inlined_call_operand.vmem [shape: f32[16,128], index: 0, kind: input, shape index: {}]   ;;  %s311_s1 = inlined_call_operand.vmem [shape: s32[16,1], index: 1, kind: input, shape index: {}]   ;;  %s312_s2 = inlined_call_operand.hbm [shape: f32[7,128], index: 2, kind: input, shape index: {}]   ;;  %s313_s3 = inlined_call_operand.vmem [shape: f32[1,128], index: 3, kind: input, shape index: {}]   ;;  %s314_s4 = inlined_call_operand.vmem [shape: f32[1,128], index: 4, kind: input, shape index: {}]   ;;  %s315_s5 = inlined_call_operand.vmem [shape: f32[1,128], index: 5, kind: input, shape index: {}]   ;;  %s316_s6 = inlined_call_operand.hbm [shape: f32[16,128], index: 6, kind: output, shape index: {}]  }
   0x1   :  { %12 = vsyncpa [#allocation4], 0  ;;  %s22_s23 = sshll.u32 %s312_s2, 4  ;;  %s243_s24 = smov [#allocation2]   ;;  %s23_s23 = int_to_ptr.hbm [resolvable:$true] %s22_s23 }
   0x2   :  { %s24_s25 = sshll.u32 %s243_s24, 4  ;;  %s25_s25 = int_to_ptr.vmem [resolvable:$true] %s24_s25 }
   0x3   :  { %27 = dma.hbm_to_vmem [thread:$0]  %s23_s23, 128, %s25_s25, [#allocation3]  }
   0x4   :  { %239 = dma.done.wait [#allocation3], 128  }
   0x5   :  { %240 = vsyncadd [#allocation3], 4294967168  ;;  %v244_v0 = vmov 0   ;;  %v38_v1 = vld [vmem:[%s311_s1] sm:$0xff]  ;;  %v39_v2 = vld [vmem:[%s311_s1 + $0x8] sm:$0xff]  ;;  %s158_s15 = sshll.u32 %s316_s6, 4  ;;  %s159_s15 = int_to_ptr.hbm [resolvable:$true] %s158_s15 }
   0x6   :  { %176 = vset.pattern.permute.xlu0 %v244_v0  ;;  %v177_v3 = vld [vmem:[#allocation2] ss:$0 sm:$0xff]  ;;  %v178_v4 = vld [vmem:[#allocation2 + $0x1] ss:$0 sm:$0xff]  ;;  %v179_v6 = vld [vmem:[#allocation2 + $0x2] ss:$0 sm:$0xff] }
   0x7   :  { %41 = vperm.xlu0 %176, %v38_v1   ;;  %v180_v7 = vld [vmem:[#allocation2 + $0x3] ss:$0 sm:$0xff]  ;;  %v181_v9 = vld [vmem:[#allocation2 + $0x4] ss:$0 sm:$0xff]  ;;  %v182_v11 = vld [vmem:[#allocation2 + $0x5] ss:$0 sm:$0xff] }
   0x8   :  { %v183_v13 = vld [vmem:[#allocation2 + $0x6] ss:$0 sm:$0xff]  ;;  %v89_v26 = vld [vmem:[%s310_s0 + $0x8] sm:$0xff]  ;;  %v184_v32 = vld [vmem:[%s315_s5] ss:$0 sm:$0xff]  ;;  %s247_s16 = smov 8  }
   0x9   :  { %v88_v16 = vld [vmem:[%s310_s0] sm:$0xff] }
   0xa   :  { %v185_v55 = vld [vmem:[%s313_s3] ss:$0 sm:$0xff]  ;;  %s245_s3 = smov [#allocation5]  }
   0xb   :  { %v186_v59 = vld [vmem:[%s314_s4] ss:$0 sm:$0xff]  ;;  %s156_s12 = sshll.u32 %s245_s3, 4  ;;  %s246_s4 = smov 128   ;;  %s157_s12 = int_to_ptr.vmem [resolvable:$true] %s156_s12 }
   0xf   :  { %44 = vperm.xlu0 %176, %v39_v2  }
  0x79   :  { %v42_v5 = vpop.permute.xlu0 %41 }
  0x7a   :  { %vm47_vm0 = vcmp.eq.s32.totalorder %v42_v5, 0  ;;  %vm53_vm1 = vcmp.eq.s32.totalorder %v42_v5, 1  ;;  %vm59_vm2 = vcmp.eq.s32.totalorder %v42_v5, 2  ;;  %vm65_vm3 = vcmp.eq.s32.totalorder %v42_v5, 3 }
  0x7b   :  { %v50_v8 = vsel %vm47_vm0, %v177_v3, 0.0  ;;  %vm71_vm4 = vcmp.eq.s32.totalorder %v42_v5, 4  ;;  %vm77_vm5 = vcmp.eq.s32.totalorder %v42_v5, 5  ;;  %vm83_vm6 = vcmp.eq.s32.totalorder %v42_v5, 6 }
  0x7c   :  { %v56_v10 = vsel %vm53_vm1, %v178_v4, %v50_v8 }
  0x7d   :  { %v62_v12 = vsel %vm59_vm2, %v179_v6, %v56_v10 }
  0x7e   :  { %v68_v14 = vsel %vm65_vm3, %v180_v7, %v62_v12 }
  0x7f   :  { %v74_v15 = vsel %vm71_vm4, %v181_v9, %v68_v14 }
  0x80   :  { %v80_v17 = vsel %vm77_vm5, %v182_v11, %v74_v15 }
  0x81   :  { %v45_v18 = vpop.permute.xlu0 %44  ;;  %v86_v19 = vsel %vm83_vm6, %v183_v13, %v80_v17 }
  0x82   :  { %vm48_vm7 = vcmp.eq.s32.totalorder %v45_v18, 0  ;;  %vm54_vm8 = vcmp.eq.s32.totalorder %v45_v18, 1  ;;  %v90_v20 = vadd.f32 %v88_v16, %v86_v19  ;;  %vm60_vm9 = vcmp.eq.s32.totalorder %v45_v18, 2 }
  0x83   :  { %v51_v21 = vsel %vm48_vm7, %v177_v3, 0.0  ;;  %vm66_vm10 = vcmp.eq.s32.totalorder %v45_v18, 3  ;;  %vm72_vm11 = vcmp.eq.s32.totalorder %v45_v18, 4  ;;  %vm78_vm12 = vcmp.eq.s32.totalorder %v45_v18, 5 }
  0x84   :  { %92 = vadd.xlane.f32.xlu1 %v90_v20  ;;  %v57_v22 = vsel %vm54_vm8, %v178_v4, %v51_v21  ;;  %vm84_vm13 = vcmp.eq.s32.totalorder %v45_v18, 6 }
  0x85   :  { %v63_v23 = vsel %vm60_vm9, %v179_v6, %v57_v22 }
  0x86   :  { %v69_v24 = vsel %vm66_vm10, %v180_v7, %v63_v23 }
  0x87   :  { %v75_v25 = vsel %vm72_vm11, %v181_v9, %v69_v24 }
  0x88   :  { %v81_v27 = vsel %vm78_vm12, %v182_v11, %v75_v25 }
  0x89   :  { %v87_v28 = vsel %vm84_vm13, %v183_v13, %v81_v27 }
  0x8a   :  { %v91_v29 = vadd.f32 %v89_v26, %v87_v28 }
  0x8c   :  { %94 = vadd.xlane.f32.xlu1 %v91_v29 }
  0xf7   :  { %v93_v30 = vpop.xlane.xlu1 %92 }
  0xf8   :  { %v96_v31 = vmul.f32 0.03125, %v93_v30 }
  0xfa   :  { %v98_v33 = vsub.f32 %v90_v20, %v96_v31 }
  0xfc   :  { %v104_v34 = vmul.f32 %v184_v32, %v98_v33 }
  0xfe   :  { %v106_v35 = vmul.f32 %v104_v34, %v104_v34 }
  0xff   :  { %v95_v36 = vpop.xlane.xlu1 %94 }
 0x100   :  { %v97_v37 = vmul.f32 0.03125, %v95_v36  ;;  %108 = vadd.xlane.f32.xlu2 %v106_v35 }
 0x102   :  { %v99_v38 = vsub.f32 %v91_v29, %v97_v37 }
 0x104   :  { %v105_v39 = vmul.f32 %v184_v32, %v99_v38 }
 0x106   :  { %v107_v40 = vmul.f32 %v105_v39, %v105_v39 }
 0x108   :  { %110 = vadd.xlane.f32.xlu2 %v107_v40 }
 0x173   :  { %v109_v41 = vpop.xlane.xlu2 %108 }
 0x174   :  { %v112_v42 = vmul.f32 0.03125, %v109_v41 }
 0x176   :  { %v114_v43 = vadd.f32 1e-12, %v112_v42 }
 0x178   :  { %187 = vrsqrt.f32 %v114_v43  ;;  %vm122_vm15 = vweird.f32 %v114_v43 }
 0x17b   :  { %v111_v44 = vpop.xlane.xlu2 %110 }
 0x17c   :  { %v113_v45 = vmul.f32 0.03125, %v111_v44 }
 0x17e   :  { %v188_v46 = vpop.eup %187  ;;  %v115_v47 = vadd.f32 1e-12, %v113_v45 }
 0x17f   :  { %v117_v48 = vmul.f32 %v188_v46, %v114_v43  ;;  %vm123_vm14 = vweird.f32 %v188_v46 }
 0x180   :  { %189 = vrsqrt.f32 %v115_v47  ;;  %vm124_vm0 = vmor %vm122_vm15, %vm123_vm14  ;;  %vm132_vm2 = vweird.f32 %v115_v47 }
 0x181   :  { %v118_v49 = vmul.f32 %v188_v46, %v117_v48 }
 0x183   :  { %v119_v50 = vmul.f32 0.5, %v118_v49 }
 0x185   :  { %v120_v51 = vsub.f32 1.5, %v119_v50 }
 0x186   :  { %v190_v52 = vpop.eup %189 }
 0x187   :  { %v121_v53 = vmul.f32 %v188_v46, %v120_v51  ;;  %v127_v54 = vmul.f32 %v190_v52, %v115_v47  ;;  %vm133_vm1 = vweird.f32 %v190_v52 }
 0x188   :  { %vm134_vm3 = vmor %vm132_vm2, %vm133_vm1 }
 0x189   :  { %v125_v56 = vsel %vm124_vm0, %v188_v46, %v121_v53  ;;  %v128_v57 = vmul.f32 %v190_v52, %v127_v54 }
 0x18a   :  { %v136_v58 = vmul.f32 %v125_v56, %v104_v34 }
 0x18b   :  { %v129_v60 = vmul.f32 0.5, %v128_v57 }
 0x18c   :  { %v142_v61 = vmul.f32 %v185_v55, %v136_v58 }
 0x18d   :  { %v130_v62 = vsub.f32 1.5, %v129_v60 }
 0x18e   :  { %v148_v63 = vadd.f32 %v186_v59, %v142_v61 }
 0x18f   :  { %v131_v0 = vmul.f32 %v190_v52, %v130_v62 }
 0x190   :  { %150 = vst [vmem:[#allocation5] sm:$0xff] %v148_v63 }
 0x191   :  { %v135_v1 = vsel %vm134_vm3, %v190_v52, %v131_v0 }
 0x192   :  { %v137_v2 = vmul.f32 %v135_v1, %v105_v39 }
 0x194   :  { %v143_v3 = vmul.f32 %v185_v55, %v137_v2 }
 0x196   :  { %v149_v4 = vadd.f32 %v186_v59, %v143_v3 }
 0x198   :  { %151 = vst [vmem:[#allocation5 + $0x8] sm:$0xff] %v149_v4 }
 0x199   :  { %164 = dma.vmem_to_hbm [thread:$0]  %s157_s12, 256, %s159_s15, [#allocation4], %s246_s4, %s246_s4, %s247_s16  }
 0x19a   :  { %241 = dma.done.wait [#allocation4], 256  }
 0x19b   :  { %242 = vsyncadd [#allocation4], 4294967040 }
 0x19c   :  { %169 = vsyncpa [#allocation3], 1 }
 0x19d   :  { %170 = vsyncpa [#allocation4], 1 }

</bundles_post_ra>
